<compile_context>
chip_gen: v5e
topology: v5e:2x2
jax: 0.10.0
libtpu: 0.0.40
codegen_flags: <defaults>
</compile_context>

<pallas_src>
import jax
import jax.numpy as jnp
from jax.experimental import pallas as pl
from jax.experimental.pallas import tpu as pltpu


def _round_up(x, m):
    return (x + m - 1) // m * m


def _round_down(x, m):
    return (x // m) * m


# ----------------------------------------------------------------------------
# Kernel: one batch tile x one output tile of  y = x @ W_eff + b
# ----------------------------------------------------------------------------
def _tower_linear_kernel(x_ref, w_ref, b_ref, o_ref):
    # x_ref: (tm, k_dim)   compute dtype (f32 or bf16)
    # w_ref: (k_dim, tn)   compute dtype; pre-transposed (+column-permuted) weight
    # b_ref: (1, tn)       f32
    # o_ref: (tm, tn)      output dtype
    acc = jnp.dot(x_ref[...], w_ref[...], preferred_element_type=jnp.float32)
    o_ref[...] = (acc + b_ref[...]).astype(o_ref.dtype)


# ----------------------------------------------------------------------------
# Wrapper: TestTowerInteraction.forward
# ----------------------------------------------------------------------------
def test_tower_interaction_forward(values, key_layout, feature_order, weight, bias,
                                   *, compute_dtype=jnp.bfloat16,
                                   max_tm=2048, max_tn=512):
    """Fused (feature gather/concat + Linear).

    values:        (B, D_total) contiguous KeyedTensor backing buffer
    key_layout:    {feature_name: (offset, length)} in storage order
    feature_order: self._features (order in which slices are concatenated)
    weight:        (D_out, D_in) float32 -- PyTorch nn.Linear layout
    bias:          (D_out,) float32
    """
    values = jnp.asarray(values)
    weight = jnp.asarray(weight, dtype=jnp.float32)
    bias = jnp.asarray(bias, dtype=jnp.float32)

    B, d_total = values.shape
    d_out, d_in = weight.shape

    # --- Fuse the feature-order permutation into the weight (one-time, tiny) ---
    src_cols = []
    for name in feature_order:
        off, ln = key_layout[name]
        src_cols.extend(range(off, off + ln))
    assert len(src_cols) == d_in and d_in <= d_total

    w_t = weight.T                                        # (d_in, d_out)
    if tuple(src_cols) == tuple(range(d_in)) and d_in == d_total:
        w_eff = w_t                                       # storage order == concat order
    else:
        # Scatter weight rows so the kernel consumes `values` in its native layout;
        # unused storage columns (if any) get zero weight rows.
        idx = jnp.asarray(src_cols, dtype=jnp.int32)
        w_eff = jnp.zeros((d_total, d_out), jnp.float32).at[idx].set(w_t)
    k_dim = d_total

    out_dtype = values.dtype
    x = values.astype(compute_dtype)
    w_eff = w_eff.astype(compute_dtype)
    b2d = bias.reshape(1, d_out)

    x_it = jnp.dtype(compute_dtype).itemsize
    w_it = x_it
    out_it = jnp.dtype(out_dtype).itemsize

    # --- Output (d_out) tiling: lane-dense, multiple of 128 when possible ---
    if d_out % 128 == 0:
        tn, t = 128, 128
        while t <= min(d_out, max_tn):
            if d_out % t == 0:
                tn = t
            t += 128
    else:
        tn = d_out
    grid_n = d_out // tn

    # --- Batch tiling: sublane-aligned, VMEM-budget aware ---
    sub = 16 if x_it < 4 else 8
    try:
        vmem_cap = int(pltpu.get_tpu_info().vmem_capacity_bytes)
    except Exception:
        vmem_cap = 64 << 20                # conservative (v7x per-TC)
    budget = int(vmem_cap * 0.6)

    w_resident = 2 * k_dim * tn * w_it + 2 * tn * 4      # worst-case double buffer + bias
    per_row = 2 * (k_dim * x_it) + 2 * (tn * out_it)     # double-buffered x / out tiles
    tm = max_tm
    if budget > w_resident:
        tm = min(tm, max(sub, _round_down((budget - w_resident) // per_row, sub)))
    # TODO(synk): if the resident (k_dim, tn) weight block alone exceeds VMEM,
    # add a reduction grid axis over k_dim instead of only shrinking tm.
    tm = min(tm, _round_up(B, sub))
    # Give both v7x TensorCores work when the batch allows it.
    if grid_n == 1 and B >= 2 * sub:
        tm = min(tm, _round_up(pl.cdiv(B, 2), sub))

    grid_m = pl.cdiv(B, tm)
    b_pad = grid_m * tm
    if b_pad != B:
        x = jnp.pad(x, ((0, b_pad - B), (0, 0)))

    usage = 2 * tm * k_dim * x_it + 2 * tm * tn * out_it + w_resident
    vmem_limit = int(min(vmem_cap, max(2 * usage, 32 << 20)))

    flops = 2 * B * k_dim * d_out
    bytes_accessed = (B * k_dim * x_it + k_dim * d_out * w_it
                      + d_out * 4 + B * d_out * out_it)

    out = pl.pallas_call(
        _tower_linear_kernel,
        out_shape=jax.ShapeDtypeStruct((b_pad, d_out), out_dtype),
        grid_spec=pltpu.PrefetchScalarGridSpec(
            num_scalar_prefetch=0,
            grid=(grid_m, grid_n),
            in_specs=[
                pl.BlockSpec((tm, k_dim), lambda i, j: (i, 0)),   # x tile (streams)
                pl.BlockSpec((k_dim, tn), lambda i, j: (0, j)),   # weight (resident per j)
                pl.BlockSpec((1, tn), lambda i, j: (0, j)),       # bias   (resident per j)
            ],
            out_specs=pl.BlockSpec((tm, tn), lambda i, j: (i, j)),
        ),
        compiler_params=pltpu.CompilerParams(
            dimension_semantics=("parallel", "parallel"),
            vmem_limit_bytes=vmem_limit,
        ),
        cost_estimate=pl.CostEstimate(
            flops=flops, transcendentals=0, bytes_accessed=bytes_accessed),
    )(x, w_eff, b2d)

    return out[:B] if b_pad != B else out


if __name__ == "__main__":
    # Synthetic "EmbeddingBagConfig" setup:
    #   table_0: embedding_dim=32, feature_names=["feature_0", "feature_1"]
    #   table_1: embedding_dim=32, feature_names=["feature_2", "feature_3"]
    # in_features = 32*2 + 32*2 = 128
    tables = [
        {"embedding_dim": 32, "feature_names": ["feature_0", "feature_1"]},
        {"embedding_dim": 32, "feature_names": ["feature_2", "feature_3"]},
    ]
    feature_order = [f for t in tables for f in t["feature_names"]]
    in_features = sum(t["embedding_dim"] * len(t["feature_names"]) for t in tables)

    batch = 8
    key = jax.random.PRNGKey(0)
    keys = jax.random.split(key, len(feature_order) + 2)

    # KeyedTensor stand-in: contiguous (B, sum_dims) backing buffer + per-key ranges.
    per_feature_dims = [t["embedding_dim"] for t in tables for _ in t["feature_names"]]
    feature_slabs = [
        jax.random.normal(keys[i], (batch, d), dtype=jnp.float32)
        for i, d in enumerate(per_feature_dims)
    ]
    values = jnp.concatenate(feature_slabs, axis=1)          # KeyedTensor._values
    key_layout, off = {}, 0
    for name, d in zip(feature_order, per_feature_dims):
        key_layout[name] = (off, d)
        off += d

    # Deterministic nn.Linear(in_features, in_features) params (PyTorch-style init).
    bound = 1.0 / (in_features ** 0.5)
    weight = jax.random.uniform(
        keys[-2], (in_features, in_features), jnp.float32, -bound, bound)
    bias = jax.random.uniform(keys[-1], (in_features,), jnp.float32, -bound, bound)

    # Plain-JAX reference: concat in feature order, then x @ W.T + b.
    def reference(order):
        cols = [values[:, key_layout[n][0]:key_layout[n][0] + key_layout[n][1]]
                for n in order]
        return jnp.concatenate(cols, axis=1) @ weight.T + bias

    # 1) Exact f32 path, natural feature order.
    out_f32 = jax.block_until_ready(test_tower_interaction_forward(
        values, key_layout, feature_order, weight, bias, compute_dtype=jnp.float32))
    assert out_f32.shape == (batch, in_features)
    assert jnp.allclose(out_f32, reference(feature_order), atol=1e-5, rtol=1e-5)

    # 2) f32 path with a permuted feature order (exercises the fused weight permutation).
    shuffled = [feature_order[i] for i in (2, 0, 3, 1)]
    out_perm = jax.block_until_ready(test_tower_interaction_forward(
        values, key_layout, shuffled, weight, bias, compute_dtype=jnp.float32))
    assert jnp.allclose(out_perm, reference(shuffled), atol=1e-5, rtol=1e-5)

    # 3) bf16 compute path (v6e/v7x MXU-native), f32 accumulate, relaxed tolerance.
    out_bf16 = jax.block_until_ready(test_tower_interaction_forward(
        values, key_layout, feature_order, weight, bias, compute_dtype=jnp.bfloat16))
    assert jnp.allclose(out_bf16, reference(feature_order), atol=5e-2, rtol=5e-2)

    print("KERNEL_OK")
</pallas_src>

<mosaic_0001>
module attributes {stable_mosaic.version = 11 : i64} {
  func.func @_tower_linear_kernel(%arg0: i32, %arg1: i32, %arg2: memref<8x128xf32, #tpu.memory_space<vmem>>, %arg3: memref<128x128xf32, #tpu.memory_space<vmem>>, %arg4: memref<1x128xf32, #tpu.memory_space<vmem>>, %arg5: memref<8x128xf32, #tpu.memory_space<vmem>>) attributes {dimension_semantics = [#tpu.dimension_semantics<parallel>, #tpu.dimension_semantics<parallel>], iteration_bounds = array<i64: 1, 1>, scalar_prefetch = 0 : i64, scratch_operands = 0 : i64, tpu.core_type = #tpu.core_type<tc>, window_params = [{transform_indices = @transform_0, window_bounds = array<i64: 8, 128>}, {transform_indices = @transform_1, window_bounds = array<i64: 128, 128>}, {transform_indices = @transform_2, window_bounds = array<i64: 1, 128>}, {transform_indices = @transform_3, window_bounds = array<i64: 8, 128>}]} {
    %c0 = arith.constant 0 : index
    %c0_0 = arith.constant 0 : index
    %0 = vector.load %arg2[%c0, %c0_0] : memref<8x128xf32, #tpu.memory_space<vmem>>, vector<8x128xf32>
    %c0_1 = arith.constant 0 : index
    %c0_2 = arith.constant 0 : index
    %1 = vector.load %arg3[%c0_1, %c0_2] : memref<128x128xf32, #tpu.memory_space<vmem>>, vector<128x128xf32>
    %cst = arith.constant dense<0.000000e+00> : vector<8x128xf32>
    %2 = tpu.matmul %0, %1, %cst {dimension_numbers = #tpu.dot_dimension_numbers<[1], [0], [0], [1], [0, 0, 1, 1], [], []>} : vector<8x128xf32>, vector<128x128xf32>, vector<8x128xf32> -> vector<8x128xf32>
    %c0_3 = arith.constant 0 : index
    %c0_4 = arith.constant 0 : index
    %3 = vector.load %arg4[%c0_3, %c0_4] : memref<1x128xf32, #tpu.memory_space<vmem>>, vector<1x128xf32>
    %4 = vector.broadcast %3 : vector<1x128xf32> to vector<8x128xf32>
    %5 = arith.addf %2, %4 : vector<8x128xf32>
    %c0_5 = arith.constant 0 : index
    %c0_6 = arith.constant 0 : index
    %6 = vector.load %arg5[%c0_5, %c0_6] : memref<8x128xf32, #tpu.memory_space<vmem>>, vector<8x128xf32>
    tpu.vector_store %arg5[%c0_5, %c0_6], %5 {strides = array<i32>} : memref<8x128xf32, #tpu.memory_space<vmem>>, vector<8x128xf32>,
    return
  }
  func.func @transform_0(%arg0: i32, %arg1: i32) -> (i32, i32) {
    %c0_i32 = arith.constant 0 : i32
    %c0_i32_0 = arith.constant 0 : i32
    return %arg0, %c0_i32 : i32, i32
  }
  func.func @transform_1(%arg0: i32, %arg1: i32) -> (i32, i32) {
    %c0_i32 = arith.constant 0 : i32
    %c0_i32_0 = arith.constant 0 : i32
    return %c0_i32, %arg1 : i32, i32
  }
  func.func @transform_2(%arg0: i32, %arg1: i32) -> (i32, i32) {
    %c0_i32 = arith.constant 0 : i32
    %c0_i32_0 = arith.constant 0 : i32
    return %c0_i32, %arg1 : i32, i32
  }
  func.func @transform_3(%arg0: i32, %arg1: i32) -> (i32, i32) {
    %c0_i32 = arith.constant 0 : i32
    return %arg0, %arg1 : i32, i32
  }
}

</mosaic_0001>

<bundles_post_ra>
// kernel: tpu_custom_call.1
= control target key start
LH: loop header
LB: loop body
LE: loop exit
PB: predicated region body
PF: predicated region fallthrough
CT: control target
= control target key end

     0   :  { %8 = vsyncpa [#allocation3], 0  ;;  %s226_s0 = inlined_call_operand.hbm [shape: f32[8,128], index: 0, kind: input, shape index: {}]   ;;  %s227_s1 = inlined_call_operand.hbm [shape: f32[128,128], index: 1, kind: input, shape index: {}]   ;;  %s228_s2 = inlined_call_operand.vmem [shape: f32[1,128], index: 2, kind: input, shape index: {}]   ;;  %s229_s3 = inlined_call_operand.hbm [shape: f32[8,128], index: 3, kind: output, shape index: {}]  }
   0x1   :  { %9 = vsyncpa [#allocation6], 0 }
   0x2   :  { %10 = vsyncpa [#allocation4], 0  ;;  %s16_s14 = sshll.u32 %s226_s0, 4  ;;  %s189_s15 = smov [#allocation2]   ;;  %s17_s14 = int_to_ptr.hbm [resolvable:$true] %s16_s14 }
   0x3   :  { %s18_s16 = sshll.u32 %s189_s15, 4  ;;  %s26_s19 = sshll.u32 %s227_s1, 4  ;;  %s19_s16 = int_to_ptr.vmem [resolvable:$true] %s18_s16  ;;  %s27_s19 = int_to_ptr.hbm [resolvable:$true] %s26_s19 }
   0x4   :  { %21 = dma.hbm_to_vmem [thread:$0]  %s17_s14, 128, %s19_s16, [#allocation3]  }
   0x5   :  { %s190_s20 = smov [#allocation5]   ;;  %s191_s22 = smov 128  }
   0x6   :  { %s28_s21 = sshll.u32 %s190_s20, 4  ;;  %s192_s23 = smov 8   ;;  %s29_s21 = int_to_ptr.vmem [resolvable:$true] %s28_s21 }
   0x7   :  { %34 = dma.hbm_to_vmem [thread:$0]  %s27_s19, 2048, %s29_s21, [#allocation6], %s191_s22, %s191_s22, %s192_s23  }
   0x8   :  { %183 = dma.done.wait [#allocation3], 128  }
   0x9   :  { %184 = vsyncadd [#allocation3], 4294967168 }
   0xa   :  { %185 = dma.done.wait [#allocation6], 2048  }
   0xb   :  { %186 = vsyncadd [#allocation6], 4294965248  ;;  %v61_v0 = vld [vmem:[#allocation5 + $0x78] sm:$0xff]  ;;  %v60_v1 = vld [vmem:[#allocation5 + $0x70] sm:$0xff]  ;;  %s193_s24 = smov [#allocation7]   ;;  %s94_s28 = sshll.u32 %s229_s3, 4  ;;  %s95_s28 = int_to_ptr.hbm [resolvable:$true] %s94_s28 }
   0xc   :  { %66 = vmatpush.msra.mxu0 %v61_v0  ;;  %v59_v2 = vld [vmem:[#allocation5 + $0x68] sm:$0xff]  ;;  %v58_v3 = vld [vmem:[#allocation5 + $0x60] sm:$0xff]  ;;  %v57_v4 = vld [vmem:[#allocation5 + $0x58] sm:$0xff]  ;;  %s92_s25 = sshll.u32 %s193_s24, 4  ;;  %s93_s25 = int_to_ptr.vmem [resolvable:$true] %s92_s25 }
   0xd   :  { %v56_v5 = vld [vmem:[#allocation5 + $0x50] sm:$0xff]  ;;  %v55_v6 = vld [vmem:[#allocation5 + $0x48] sm:$0xff]  ;;  %v54_v7 = vld [vmem:[#allocation5 + $0x40] sm:$0xff] }
   0xe   :  { %67 = vmatpush.msra.mxu0 %v60_v1  ;;  %v53_v8 = vld [vmem:[#allocation5 + $0x38] sm:$0xff]  ;;  %v52_v9 = vld [vmem:[#allocation5 + $0x30] sm:$0xff]  ;;  %v51_v10 = vld [vmem:[#allocation5 + $0x28] sm:$0xff] }
   0xf   :  { %v50_v11 = vld [vmem:[#allocation5 + $0x20] sm:$0xff]  ;;  %v49_v12 = vld [vmem:[#allocation5 + $0x18] sm:$0xff]  ;;  %v48_v13 = vld [vmem:[#allocation5 + $0x10] sm:$0xff] }
  0x10   :  { %68 = vmatpush.msra.mxu0 %v59_v2  ;;  %v47_v14 = vld [vmem:[#allocation5 + $0x8] sm:$0xff]  ;;  %v46_v15 = vld [vmem:[#allocation5] sm:$0xff]  ;;  %v45_v16 = vld [vmem:[#allocation2] sm:$0xff] }
  0x11   :  { %v110_v17 = vld [vmem:[%s228_s2] ss:$0 sm:$0xff] }
  0x12   :  { %69 = vmatpush.msra.mxu0 %v58_v3 }
  0x14   :  { %70 = vmatpush.msra.mxu0 %v57_v4 }
  0x16   :  { %71 = vmatpush.msra.mxu0 %v56_v5 }
  0x18   :  { %72 = vmatpush.msra.mxu0 %v55_v6 }
  0x1a   :  { %73 = vmatpush.msra.mxu0 %v54_v7 }
  0x1c   :  { %74 = vmatpush.msra.mxu0 %v53_v8 }
  0x1e   :  { %75 = vmatpush.msra.mxu0 %v52_v9 }
  0x20   :  { %76 = vmatpush.msra.mxu0 %v51_v10 }
  0x22   :  { %77 = vmatpush.msra.mxu0 %v50_v11 }
  0x24   :  { %78 = vmatpush.msra.mxu0 %v49_v12 }
  0x26   :  { %79 = vmatpush.msra.mxu0 %v48_v13 }
  0x28   :  { %80 = vmatpush.msra.mxu0 %v47_v14 }
  0x2a   :  { %81 = vmatpush.msra.mxu0 %v46_v15 }
  0x2b   :  { %82 = vmatmul.f32.vlgmr.msra.gmra.mxu0 %v45_v16 }
  0xa8   :  { %v83_v18 = vpop.f32.mrf.mxu0 }
  0xa9   :  { %v84_v19 = vadd.f32 %v110_v17, %v83_v18 }
  0xab   :  { %86 = vst [vmem:[#allocation7] sm:$0xff] %v84_v19 }
  0xac   :  { %97 = dma.vmem_to_hbm [thread:$0]  %s93_s25, 128, %s95_s28, [#allocation4]  }
  0xad   :  { %187 = dma.done.wait [#allocation4], 128  }
  0xae   :  { %188 = vsyncadd [#allocation4], 4294967168 }
  0xaf   :  { %102 = vsyncpa [#allocation3], 1 }
  0xb0   :  { %103 = vsyncpa [#allocation6], 1 }
  0xb1   :  { %104 = vsyncpa [#allocation4], 1 }

</bundles_post_ra>
